<compile_context>
chip_gen: v7x
topology: tpu7x:2x2x1
jax: 0.10.0
libtpu: 0.0.40
codegen_flags: <defaults>
</compile_context>

<pallas_src>
import math

import jax
import jax.numpy as jnp
from jax import lax
from jax.experimental import pallas as pl
from jax.experimental.pallas import tpu as pltpu

LANES = 128


def _round_up(x: int, m: int) -> int:
    return ((x + m - 1) // m) * m


def _make_kernel(steps: int, tm: int, rows_valid: int):
    """Kernel factory closing over inner-step count, tile rows and valid rows."""

    def kernel(pred_ref, targ_ref, st_ref, st2_ref, sr2_ref):
        c = pl.program_id(0)   # chunk ("parallel")
        i = pl.program_id(1)   # streaming step within chunk ("arbitrary")

        @pl.when(i == 0)
        def _init():
            st_ref[...] = jnp.zeros_like(st_ref)
            st2_ref[...] = jnp.zeros_like(st2_ref)
            sr2_ref[...] = jnp.zeros_like(sr2_ref)

        # Intended (un-clamped) row offset of this tile in the full array.
        row_start = (c * steps + i) * tm
        n_valid = rows_valid - row_start   # may be <=0 (fully OOB duplicate tile)

        def accumulate(t, p):
            r = t - p
            # Splitting only the major axis: (tm,128) -> (tm//8, 8, 128) keeps
            # each (8,128) slab a whole vreg group, so the axis-0 sums are pure
            # elementwise VPU adds (no relayout, no XLU).
            t3 = t.reshape(tm // 8, 8, LANES)
            r3 = (r * r).reshape(tm // 8, 8, LANES)
            st_ref[0] += jnp.sum(t3, axis=0)
            st2_ref[0] += jnp.sum(t3 * t3, axis=0)
            sr2_ref[0] += jnp.sum(r3, axis=0)

        @pl.when(n_valid >= tm)
        def _full():
            accumulate(targ_ref[...].astype(jnp.float32),
                       pred_ref[...].astype(jnp.float32))

        @pl.when(n_valid < tm)
        def _partial():
            # Boundary tile: rows past the array end hold unspecified data;
            # select (not multiply) so NaN/Inf garbage cannot leak in.
            rows = lax.broadcasted_iota(jnp.int32, (tm, LANES), 0)
            keep = rows < n_valid
            t = jnp.where(keep, targ_ref[...].astype(jnp.float32), 0.0)
            p = jnp.where(keep, pred_ref[...].astype(jnp.float32), 0.0)
            accumulate(t, p)

    return kernel


def inverted_r2_score(prediction: jax.Array, targets: jax.Array,
                      *, tile_rows: int | None = None,
                      num_chunks: int = 2) -> jax.Array:
    """Pallas implementation of the (inverted) R2Score forward pass."""
    assert prediction.shape == targets.shape

    # TODO(synk): PyTorch len() raises on 0-d inputs; we fall back to 1.
    n_len = targets.shape[0] if targets.ndim > 0 else 1
    n_total = int(math.prod(targets.shape))

    pred_flat = prediction.reshape(-1)
    targ_flat = targets.reshape(-1)

    rows_main = n_total // LANES

    p_item = jnp.dtype(prediction.dtype).itemsize
    t_item = jnp.dtype(targets.dtype).itemsize
    itemsize = min(p_item, t_item)
    # Sub-32-bit dtypes pack along sublanes -> keep tile rows packed-aligned.
    min_rows = 8 * max(1, 4 // itemsize)

    if tile_rows is None:
        # ~4 MiB per input per pipeline buffer -> well past the pipelining knee.
        tile_rows = (4 << 20) // (LANES * itemsize)

    s_t = jnp.float32(0.0)
    s_t2 = jnp.float32(0.0)
    s_r2 = jnp.float32(0.0)
    main_elems = 0

    if rows_main >= min_rows:
        main_elems = rows_main * LANES
        tm = _round_up(min(tile_rows, _round_up(rows_main, min_rows)), min_rows)
        total_blocks = pl.cdiv(rows_main, tm)
        chunks = max(1, min(num_chunks, total_blocks))
        steps = pl.cdiv(total_blocks, chunks)

        # For 128-aligned tensors this is a pure (copy-free) reshape; only a
        # non-multiple-of-128 element count pays a prefix-slice.
        pred2d = pred_flat[:main_elems].reshape(rows_main, LANES)
        targ2d = targ_flat[:main_elems].reshape(rows_main, LANES)

        def in_map(c, i):
            # Clamp so grid points past the last block re-fetch a valid tile;
            # the kernel masks them out via the un-clamped row_start.
            return (jnp.minimum(c * steps + i, total_blocks - 1), 0)

        def out_map(c, i):
            return (c, 0, 0)

        kernel = _make_kernel(steps, tm, rows_main)
        part_shape = jax.ShapeDtypeStruct((chunks, 8, LANES), jnp.float32)

        # 2 pipeline buffers x both inputs, plus margin; capped for v7x's
        # 64 MiB physical VMEM, floored above v5e's 16 MiB scoped default.
        vmem_need = 2 * tm * LANES * (p_item + t_item)
        vmem_limit = int(min(max(vmem_need + (8 << 20), 32 << 20), 48 << 20))

        st, st2, sr2 = pl.pallas_call(
            kernel,
            out_shape=(part_shape, part_shape, part_shape),
            grid_spec=pltpu.PrefetchScalarGridSpec(
                num_scalar_prefetch=0,
                grid=(chunks, steps),
                in_specs=[
                    pl.BlockSpec((tm, LANES), in_map),
                    pl.BlockSpec((tm, LANES), in_map),
                ],
                out_specs=[
                    pl.BlockSpec((1, 8, LANES), out_map),
                    pl.BlockSpec((1, 8, LANES), out_map),
                    pl.BlockSpec((1, 8, LANES), out_map),
                ],
            ),
            compiler_params=pltpu.CompilerParams(
                dimension_semantics=("parallel", "arbitrary"),
                vmem_limit_bytes=vmem_limit,
            ),
        )(pred2d, targ2d)

        s_t = jnp.sum(st)
        s_t2 = jnp.sum(st2)
        s_r2 = jnp.sum(sr2)

    # Tail (< 128 elements, or everything for tiny inputs): plain JAX.
    if main_elems < n_total:
        t_tail = targ_flat[main_elems:].astype(jnp.float32)
        p_tail = pred_flat[main_elems:].astype(jnp.float32)
        r_tail = t_tail - p_tail
        s_t = s_t + jnp.sum(t_tail)
        s_t2 = s_t2 + jnp.sum(t_tail * t_tail)
        s_r2 = s_r2 + jnp.sum(r_tail * r_tail)

    mean = s_t / jnp.float32(n_len)
    ss_tot = s_t2 - 2.0 * mean * s_t + jnp.float32(n_total) * mean * mean
    return s_r2 / ss_tot


def _reference(prediction, targets):
    t = targets.astype(jnp.float32)
    p = prediction.astype(jnp.float32)
    mean = jnp.sum(t) / targets.shape[0]
    ss_res = jnp.sum((t - p) ** 2)
    ss_tot = jnp.sum((t - mean) ** 2)
    return ss_res / ss_tot


if __name__ == "__main__":
    key = jax.random.PRNGKey(0)

    # Case 1: lane-aligned total (copy-free), small tiles -> multi-step
    # accumulation across both chunks (init / accumulate path on each TC).
    kp, kt = jax.random.split(jax.random.fold_in(key, 0))
    pred = jax.random.normal(kp, (16, 256), dtype=jnp.float32)
    targ = jax.random.normal(kt, (16, 256), dtype=jnp.float32) * 2.0 + 0.5
    out1 = jax.block_until_ready(inverted_r2_score(pred, targ, tile_rows=8))
    ref1 = _reference(pred, targ)
    assert jnp.allclose(out1, ref1, rtol=1e-4, atol=1e-5), (out1, ref1)

    # Case 2: non-multiple-of-128 element count, odd row count, len != total
    # -> exercises the masked partial block, the clamped fully-OOB duplicate
    # block, and the <128-element tail handled outside the kernel.
    kp, kt = jax.random.split(jax.random.fold_in(key, 1))
    pred = jax.random.normal(kp, (4, 19, 29), dtype=jnp.float32)
    targ = jax.random.normal(kt, (4, 19, 29), dtype=jnp.float32) + 1.25
    out2 = jax.block_until_ready(inverted_r2_score(pred, targ, tile_rows=8))
    ref2 = _reference(pred, targ)
    assert jnp.allclose(out2, ref2, rtol=1e-4, atol=1e-5), (out2, ref2)

    # Case 3: bf16 ingestion (half the HBM bytes), partial last block + tail,
    # f32 accumulation in-kernel.
    kp, kt = jax.random.split(jax.random.fold_in(key, 2))
    pred_bf = (jax.random.normal(kp, (4, 20, 33), dtype=jnp.float32)
               ).astype(jnp.bfloat16)
    targ_bf = (jax.random.normal(kt, (4, 20, 33), dtype=jnp.float32) + 1.25
               ).astype(jnp.bfloat16)
    out3 = jax.block_until_ready(
        inverted_r2_score(pred_bf, targ_bf, tile_rows=16))
    ref3 = _reference(pred_bf.astype(jnp.float32), targ_bf.astype(jnp.float32))
    assert jnp.allclose(out3, ref3, rtol=1e-3, atol=1e-4), (out3, ref3)

    # Case 4: default (large) tile rows -> whole tensor in one tile per chunk.
    out4 = jax.block_until_ready(
        inverted_r2_score(*jax.random.split(jax.random.fold_in(key, 0)) and
                          (pred, targ)) if False else
        inverted_r2_score(jax.random.normal(kp, (16, 256), dtype=jnp.float32),
                          jax.random.normal(kt, (16, 256), dtype=jnp.float32)
                          * 2.0 + 0.5))
    ref4 = _reference(jax.random.normal(kp, (16, 256), dtype=jnp.float32),
                      jax.random.normal(kt, (16, 256), dtype=jnp.float32)
                      * 2.0 + 0.5)
    assert jnp.allclose(out4, ref4, rtol=1e-4, atol=1e-5), (out4, ref4)

    print("KERNEL_OK")
</pallas_src>

<mosaic_0001>
module attributes {stable_mosaic.version = 11 : i64} {
  func.func @kernel(%arg0: i32, %arg1: i32, %arg2: memref<8x128xf32, #tpu.memory_space<vmem>>, %arg3: memref<8x128xf32, #tpu.memory_space<vmem>>, %arg4: memref<1x8x128xf32, #tpu.memory_space<vmem>>, %arg5: memref<1x8x128xf32, #tpu.memory_space<vmem>>, %arg6: memref<1x8x128xf32, #tpu.memory_space<vmem>>) attributes {dimension_semantics = [#tpu.dimension_semantics<parallel>, #tpu.dimension_semantics<arbitrary>], iteration_bounds = array<i64: 2, 2>, scalar_prefetch = 0 : i64, scratch_operands = 0 : i64, tpu.core_type = #tpu.core_type<tc>, window_params = [{transform_indices = @transform_0, window_bounds = array<i64: 8, 128>}, {transform_indices = @transform_1, window_bounds = array<i64: 8, 128>}, {transform_indices = @transform_2, window_bounds = array<i64: 1, 8, 128>}, {transform_indices = @transform_3, window_bounds = array<i64: 1, 8, 128>}, {transform_indices = @transform_4, window_bounds = array<i64: 1, 8, 128>}]} {
    %c0_i32 = arith.constant 0 : i32
    %0 = arith.cmpi eq, %arg1, %c0_i32 : i32
    %1 = arith.extui %0 : i1 to i32
    %c0_i32_0 = arith.constant 0 : i32
    %2 = arith.cmpi ne, %1, %c0_i32_0 : i32
    scf.if %2 {
      %cst = arith.constant 0.000000e+00 : f32
      %13 = vector.broadcast %cst : f32 to vector<1x8x128xf32>
      %c0 = arith.constant 0 : index
      %c0_5 = arith.constant 0 : index
      %c0_6 = arith.constant 0 : index
      %14 = vector.load %arg4[%c0, %c0_5, %c0_6] : memref<1x8x128xf32, #tpu.memory_space<vmem>>, vector<1x8x128xf32>
      tpu.vector_store %arg4[%c0, %c0_5, %c0_6], %13 {strides = array<i32>} : memref<1x8x128xf32, #tpu.memory_space<vmem>>, vector<1x8x128xf32>,
      %cst_7 = arith.constant 0.000000e+00 : f32
      %15 = vector.broadcast %cst_7 : f32 to vector<1x8x128xf32>
      %c0_8 = arith.constant 0 : index
      %c0_9 = arith.constant 0 : index
      %c0_10 = arith.constant 0 : index
      %16 = vector.load %arg5[%c0_8, %c0_9, %c0_10] : memref<1x8x128xf32, #tpu.memory_space<vmem>>, vector<1x8x128xf32>
      tpu.vector_store %arg5[%c0_8, %c0_9, %c0_10], %15 {strides = array<i32>} : memref<1x8x128xf32, #tpu.memory_space<vmem>>, vector<1x8x128xf32>,
      %cst_11 = arith.constant 0.000000e+00 : f32
      %17 = vector.broadcast %cst_11 : f32 to vector<1x8x128xf32>
      %c0_12 = arith.constant 0 : index
      %c0_13 = arith.constant 0 : index
      %c0_14 = arith.constant 0 : index
      %18 = vector.load %arg6[%c0_12, %c0_13, %c0_14] : memref<1x8x128xf32, #tpu.memory_space<vmem>>, vector<1x8x128xf32>
      tpu.vector_store %arg6[%c0_12, %c0_13, %c0_14], %17 {strides = array<i32>} : memref<1x8x128xf32, #tpu.memory_space<vmem>>, vector<1x8x128xf32>,
    } else {
    }
    %c2_i32 = arith.constant 2 : i32
    %3 = arith.muli %arg0, %c2_i32 : i32
    %4 = arith.addi %3, %arg1 : i32
    %c8_i32 = arith.constant 8 : i32
    %5 = arith.muli %4, %c8_i32 : i32
    %c32_i32 = arith.constant 32 : i32
    %6 = arith.subi %c32_i32, %5 : i32
    %c8_i32_1 = arith.constant 8 : i32
    %7 = arith.cmpi sge, %6, %c8_i32_1 : i32
    %8 = arith.extui %7 : i1 to i32
    %c0_i32_2 = arith.constant 0 : i32
    %9 = arith.cmpi ne, %8, %c0_i32_2 : i32
    scf.if %9 {
      %c0 = arith.constant 0 : index
      %c0_5 = arith.constant 0 : index
      %13 = vector.load %arg3[%c0, %c0_5] : memref<8x128xf32, #tpu.memory_space<vmem>>, vector<8x128xf32>
      %c0_6 = arith.constant 0 : index
      %c0_7 = arith.constant 0 : index
      %14 = vector.load %arg2[%c0_6, %c0_7] : memref<8x128xf32, #tpu.memory_space<vmem>>, vector<8x128xf32>
      %15 = arith.subf %13, %14 : vector<8x128xf32>
      %16 = vector.shape_cast %13 : vector<8x128xf32> to vector<1x8x128xf32>
      %17 = arith.mulf %15, %15 : vector<8x128xf32>
      %18 = vector.shape_cast %17 : vector<8x128xf32> to vector<1x8x128xf32>
      %c0_8 = arith.constant 0 : index
      %c0_9 = arith.constant 0 : index
      %c0_10 = arith.constant 0 : index
      %19 = vector.load %arg4[%c0_8, %c0_9, %c0_10] : memref<1x8x128xf32, #tpu.memory_space<vmem>>, vector<1x8x128xf32>
      %20 = vector.shape_cast %19 : vector<1x8x128xf32> to vector<8x128xf32>
      %cst = arith.constant dense<0.000000e+00> : vector<8x128xf32>
      %21 = vector.multi_reduction <add>, %16, %cst [0] : vector<1x8x128xf32> to vector<8x128xf32>
      %22 = arith.addf %20, %21 : vector<8x128xf32>
      %c0_11 = arith.constant 0 : index
      %c0_12 = arith.constant 0 : index
      %c0_13 = arith.constant 0 : index
      %23 = vector.load %arg4[%c0_11, %c0_12, %c0_13] : memref<1x8x128xf32, #tpu.memory_space<vmem>>, vector<1x8x128xf32>
      %24 = vector.shape_cast %23 : vector<1x8x128xf32> to vector<8x128xf32>
      %25 = vector.shape_cast %22 : vector<8x128xf32> to vector<1x8x128xf32>
      tpu.vector_store %arg4[%c0_11, %c0_12, %c0_13], %25 {strides = array<i32>} : memref<1x8x128xf32, #tpu.memory_space<vmem>>, vector<1x8x128xf32>,
      %c0_14 = arith.constant 0 : index
      %c0_15 = arith.constant 0 : index
      %c0_16 = arith.constant 0 : index
      %26 = vector.load %arg5[%c0_14, %c0_15, %c0_16] : memref<1x8x128xf32, #tpu.memory_space<vmem>>, vector<1x8x128xf32>
      %27 = vector.shape_cast %26 : vector<1x8x128xf32> to vector<8x128xf32>
      %28 = arith.mulf %16, %16 : vector<1x8x128xf32>
      %cst_17 = arith.constant dense<0.000000e+00> : vector<8x128xf32>
      %29 = vector.multi_reduction <add>, %28, %cst_17 [0] : vector<1x8x128xf32> to vector<8x128xf32>
      %30 = arith.addf %27, %29 : vector<8x128xf32>
      %c0_18 = arith.constant 0 : index
      %c0_19 = arith.constant 0 : index
      %c0_20 = arith.constant 0 : index
      %31 = vector.load %arg5[%c0_18, %c0_19, %c0_20] : memref<1x8x128xf32, #tpu.memory_space<vmem>>, vector<1x8x128xf32>
      %32 = vector.shape_cast %31 : vector<1x8x128xf32> to vector<8x128xf32>
      %33 = vector.shape_cast %30 : vector<8x128xf32> to vector<1x8x128xf32>
      tpu.vector_store %arg5[%c0_18, %c0_19, %c0_20], %33 {strides = array<i32>} : memref<1x8x128xf32, #tpu.memory_space<vmem>>, vector<1x8x128xf32>,
      %c0_21 = arith.constant 0 : index
      %c0_22 = arith.constant 0 : index
      %c0_23 = arith.constant 0 : index
      %34 = vector.load %arg6[%c0_21, %c0_22, %c0_23] : memref<1x8x128xf32, #tpu.memory_space<vmem>>, vector<1x8x128xf32>
      %35 = vector.shape_cast %34 : vector<1x8x128xf32> to vector<8x128xf32>
      %cst_24 = arith.constant dense<0.000000e+00> : vector<8x128xf32>
      %36 = vector.multi_reduction <add>, %18, %cst_24 [0] : vector<1x8x128xf32> to vector<8x128xf32>
      %37 = arith.addf %35, %36 : vector<8x128xf32>
      %c0_25 = arith.constant 0 : index
      %c0_26 = arith.constant 0 : index
      %c0_27 = arith.constant 0 : index
      %38 = vector.load %arg6[%c0_25, %c0_26, %c0_27] : memref<1x8x128xf32, #tpu.memory_space<vmem>>, vector<1x8x128xf32>
      %39 = vector.shape_cast %38 : vector<1x8x128xf32> to vector<8x128xf32>
      %40 = vector.shape_cast %37 : vector<8x128xf32> to vector<1x8x128xf32>
      tpu.vector_store %arg6[%c0_25, %c0_26, %c0_27], %40 {strides = array<i32>} : memref<1x8x128xf32, #tpu.memory_space<vmem>>, vector<1x8x128xf32>,
    } else {
    }
    %c8_i32_3 = arith.constant 8 : i32
    %10 = arith.cmpi slt, %6, %c8_i32_3 : i32
    %11 = arith.extui %10 : i1 to i32
    %c0_i32_4 = arith.constant 0 : i32
    %12 = arith.cmpi ne, %11, %c0_i32_4 : i32
    scf.if %12 {
      %13 = tpu.iota {dimensions = array<i32: 0>} : vector<8x128xi32>
      %14 = vector.broadcast %6 : i32 to vector<8x128xi32>
      %15 = arith.cmpi slt, %13, %14 : vector<8x128xi32>
      %c0 = arith.constant 0 : index
      %c0_5 = arith.constant 0 : index
      %16 = vector.load %arg3[%c0, %c0_5] : memref<8x128xf32, #tpu.memory_space<vmem>>, vector<8x128xf32>
      %cst = arith.constant 0.000000e+00 : f32
      %17 = vector.broadcast %cst : f32 to vector<8x128xf32>
      %18 = arith.select %15, %16, %17 : vector<8x128xi1>, vector<8x128xf32>
      %c0_6 = arith.constant 0 : index
      %c0_7 = arith.constant 0 : index
      %19 = vector.load %arg2[%c0_6, %c0_7] : memref<8x128xf32, #tpu.memory_space<vmem>>, vector<8x128xf32>
      %cst_8 = arith.constant 0.000000e+00 : f32
      %20 = vector.broadcast %cst_8 : f32 to vector<8x128xf32>
      %21 = arith.select %15, %19, %20 : vector<8x128xi1>, vector<8x128xf32>
      %22 = arith.subf %18, %21 : vector<8x128xf32>
      %23 = vector.shape_cast %18 : vector<8x128xf32> to vector<1x8x128xf32>
      %24 = arith.mulf %22, %22 : vector<8x128xf32>
      %25 = vector.shape_cast %24 : vector<8x128xf32> to vector<1x8x128xf32>
      %c0_9 = arith.constant 0 : index
      %c0_10 = arith.constant 0 : index
      %c0_11 = arith.constant 0 : index
      %26 = vector.load %arg4[%c0_9, %c0_10, %c0_11] : memref<1x8x128xf32, #tpu.memory_space<vmem>>, vector<1x8x128xf32>
      %27 = vector.shape_cast %26 : vector<1x8x128xf32> to vector<8x128xf32>
      %cst_12 = arith.constant dense<0.000000e+00> : vector<8x128xf32>
      %28 = vector.multi_reduction <add>, %23, %cst_12 [0] : vector<1x8x128xf32> to vector<8x128xf32>
      %29 = arith.addf %27, %28 : vector<8x128xf32>
      %c0_13 = arith.constant 0 : index
      %c0_14 = arith.constant 0 : index
      %c0_15 = arith.constant 0 : index
      %30 = vector.load %arg4[%c0_13, %c0_14, %c0_15] : memref<1x8x128xf32, #tpu.memory_space<vmem>>, vector<1x8x128xf32>
      %31 = vector.shape_cast %30 : vector<1x8x128xf32> to vector<8x128xf32>
      %32 = vector.shape_cast %29 : vector<8x128xf32> to vector<1x8x128xf32>
      tpu.vector_store %arg4[%c0_13, %c0_14, %c0_15], %32 {strides = array<i32>} : memref<1x8x128xf32, #tpu.memory_space<vmem>>, vector<1x8x128xf32>,
      %c0_16 = arith.constant 0 : index
      %c0_17 = arith.constant 0 : index
      %c0_18 = arith.constant 0 : index
      %33 = vector.load %arg5[%c0_16, %c0_17, %c0_18] : memref<1x8x128xf32, #tpu.memory_space<vmem>>, vector<1x8x128xf32>
      %34 = vector.shape_cast %33 : vector<1x8x128xf32> to vector<8x128xf32>
      %35 = arith.mulf %23, %23 : vector<1x8x128xf32>
      %cst_19 = arith.constant dense<0.000000e+00> : vector<8x128xf32>
      %36 = vector.multi_reduction <add>, %35, %cst_19 [0] : vector<1x8x128xf32> to vector<8x128xf32>
      %37 = arith.addf %34, %36 : vector<8x128xf32>
      %c0_20 = arith.constant 0 : index
      %c0_21 = arith.constant 0 : index
      %c0_22 = arith.constant 0 : index
      %38 = vector.load %arg5[%c0_20, %c0_21, %c0_22] : memref<1x8x128xf32, #tpu.memory_space<vmem>>, vector<1x8x128xf32>
      %39 = vector.shape_cast %38 : vector<1x8x128xf32> to vector<8x128xf32>
      %40 = vector.shape_cast %37 : vector<8x128xf32> to vector<1x8x128xf32>
      tpu.vector_store %arg5[%c0_20, %c0_21, %c0_22], %40 {strides = array<i32>} : memref<1x8x128xf32, #tpu.memory_space<vmem>>, vector<1x8x128xf32>,
      %c0_23 = arith.constant 0 : index
      %c0_24 = arith.constant 0 : index
      %c0_25 = arith.constant 0 : index
      %41 = vector.load %arg6[%c0_23, %c0_24, %c0_25] : memref<1x8x128xf32, #tpu.memory_space<vmem>>, vector<1x8x128xf32>
      %42 = vector.shape_cast %41 : vector<1x8x128xf32> to vector<8x128xf32>
      %cst_26 = arith.constant dense<0.000000e+00> : vector<8x128xf32>
      %43 = vector.multi_reduction <add>, %25, %cst_26 [0] : vector<1x8x128xf32> to vector<8x128xf32>
      %44 = arith.addf %42, %43 : vector<8x128xf32>
      %c0_27 = arith.constant 0 : index
      %c0_28 = arith.constant 0 : index
      %c0_29 = arith.constant 0 : index
      %45 = vector.load %arg6[%c0_27, %c0_28, %c0_29] : memref<1x8x128xf32, #tpu.memory_space<vmem>>, vector<1x8x128xf32>
      %46 = vector.shape_cast %45 : vector<1x8x128xf32> to vector<8x128xf32>
      %47 = vector.shape_cast %44 : vector<8x128xf32> to vector<1x8x128xf32>
      tpu.vector_store %arg6[%c0_27, %c0_28, %c0_29], %47 {strides = array<i32>} : memref<1x8x128xf32, #tpu.memory_space<vmem>>, vector<1x8x128xf32>,
    } else {
    }
    return
  }
  func.func @transform_0(%arg0: i32, %arg1: i32) -> (i32, i32) {
    %c2_i32 = arith.constant 2 : i32
    %0 = arith.muli %arg0, %c2_i32 : i32
    %1 = arith.addi %0, %arg1 : i32
    %c3_i32 = arith.constant 3 : i32
    %2 = arith.minsi %1, %c3_i32 : i32
    %c0_i32 = arith.constant 0 : i32
    %c0_i32_0 = arith.constant 0 : i32
    return %2, %c0_i32 : i32, i32
  }
  func.func @transform_1(%arg0: i32, %arg1: i32) -> (i32, i32) {
    %c2_i32 = arith.constant 2 : i32
    %0 = arith.muli %arg0, %c2_i32 : i32
    %1 = arith.addi %0, %arg1 : i32
    %c3_i32 = arith.constant 3 : i32
    %2 = arith.minsi %1, %c3_i32 : i32
    %c0_i32 = arith.constant 0 : i32
    %c0_i32_0 = arith.constant 0 : i32
    return %2, %c0_i32 : i32, i32
  }
  func.func @transform_2(%arg0: i32, %arg1: i32) -> (i32, i32, i32) {
    %c0_i32 = arith.constant 0 : i32
    %c0_i32_0 = arith.constant 0 : i32
    %c0_i32_1 = arith.constant 0 : i32
    return %arg0, %c0_i32, %c0_i32_0 : i32, i32, i32
  }
  func.func @transform_3(%arg0: i32, %arg1: i32) -> (i32, i32, i32) {
    %c0_i32 = arith.constant 0 : i32
    %c0_i32_0 = arith.constant 0 : i32
    %c0_i32_1 = arith.constant 0 : i32
    return %arg0, %c0_i32, %c0_i32_0 : i32, i32, i32
  }
  func.func @transform_4(%arg0: i32, %arg1: i32) -> (i32, i32, i32) {
    %c0_i32 = arith.constant 0 : i32
    %c0_i32_0 = arith.constant 0 : i32
    %c0_i32_1 = arith.constant 0 : i32
    return %arg0, %c0_i32, %c0_i32_0 : i32, i32, i32
  }
}

</mosaic_0001>

<bundles_post_ra>
// kernel: tpu_custom_call.1
= control target key start
LH: loop header
LB: loop body
LE: loop exit
PB: predicated region body
PF: predicated region fallthrough
CT: control target
= control target key end

     0   :  { %s1397_s0 = inlined_call_operand.hbm [shape: f32[32,128], index: 0, kind: input, shape index: {}]   ;;  %s1398_s1 = inlined_call_operand.hbm [shape: f32[32,128], index: 1, kind: input, shape index: {}]   ;;  %s1399_s2 = inlined_call_operand.hbm [shape: f32[2,8,128], index: 2, kind: output, shape index: {0}]   ;;  %s1400_s3 = inlined_call_operand.hbm [shape: f32[2,8,128], index: 3, kind: output, shape index: {1}]   ;;  %s1401_s4 = inlined_call_operand.hbm [shape: f32[2,8,128], index: 4, kind: output, shape index: {2}]  }
   0x1   :  { %1411 = sst [smem:[#allocation20_spill]] %s1397_s0 }
   0x2   :  { %10 = vsyncpa [#allocation3], 0 }
   0x3   :  { %12 = vsyncpa [#allocation3 + $0x1], 0 }
   0x4   :  { %13 = vsyncpa [#allocation6], 0 }
   0x5   :  { %15 = vsyncpa [#allocation6 + $0x1], 0 }
   0x6   :  { %16 = vsyncpa [#allocation4], 0 }
   0x7   :  { %18 = vsyncpa [#allocation4 + $0x1], 0 }
   0x8   :  { %19 = vsyncpa [#allocation9], 0 }
   0x9   :  { %21 = vsyncpa [#allocation9 + $0x1], 0  ;;  %s1016_s15 = smov 0   ;;  %s1018_s16 = smov 0  }
   0xa   :  { %s1020_s17 = smov 0   ;;  %s1022_s18 = smov 0  }
   0xb   :  { %s1024_s19 = smov 0   ;;  %s1026_s20 = smov 0  }
   0xc   :  { %s1028_s21 = smov 0   ;;  %s1030_s22 = smov 0  }
   0xd   :  { %s1032_s23 = smov 0   ;;  %s1034_s24 = smov 0  }
   0xe   :  { %s1036_s25 = smov 0  }
   0xf LB: > { %1412 = sst [smem:[#allocation15_spill]] %s975_s23  ;;  %s1072_s26 = sadd.s32 4294967295, %s983_s25   ;;  %s983_s25 = sphi %s1036_s25, %s27_s25   ;;  %s979_s24 = sphi %s1034_s24, %s1437_s24   ;;  %s975_s23 = sphi %s1032_s23, %s1436_s23   ;;  %s971_s22 = sphi %s1030_s22, %s1435_s22   ;;  %s967_s21 = sphi %s1028_s21, %s1434_s21   ;;  %s963_s20 = sphi %s1026_s20, %s1443_s20   ;;  %s959_s19 = sphi %s1024_s19, %s1442_s19   ;;  %s955_s18 = sphi %s1022_s18, %s1441_s18   ;;  %s951_s17 = sphi %s1020_s17, %s1440_s17   ;;  %s947_s16 = sphi %s1018_s16, %s1439_s16   ;;  %s943_s15 = sphi %s1016_s15, %s1438_s15  }
  0x10   : > { %1413 = sst [smem:[#allocation16_spill]] %s979_s24  ;;  %s1402_s27 = sadd.s32 4294967294, %s983_s25  }
  0x11   : > { %s36_s28 = sadd.s32 1, %s975_s23  ;;  %s39_s29 = sadd.s32 1, %s979_s24 }
  0x12   : > { %p37_p0 = scmp.ge.s32.totalorder %s36_s28, 2  ;;  %s588_s30 = sshll.u32 %s979_s24, 1 }
  0x13   : > { %s44_s5 = sadd.s32 %s975_s23, %s588_s30  ;;  %s54_s6 = sadd.s32 1, %s963_s20 }
  0x14   : > { %s1445_s28 = smov (%p37_p0, %s36_s28), 0  ;;  %s1447_s29 = smov (!%p37_p0, %s39_s29), %s979_s24 }
  0x15   : > { %1414 = sst [smem:[#allocation17_spill]] %s1445_s28  ;;  %p45_p1 = scmp.lt.s32.totalorder %s44_s5, 3 }
  0x16   : > { %p61_p2 = scmp.ne.s32.totalorder %s963_s20, %s959_s19  ;;  %p41_p3 = scmp.ge.s32.totalorder %s1447_s29, 2 }
  0x17   : > { %p62_p4 = scmp.eq.s32.totalorder %s983_s25, 0  ;;  %s1449_s5 = smov (!%p45_p1, %s44_s5), 3 }
  0x18   : > { %s1451_s29 = smov (%p41_p3, %s1447_s29), 0  ;;  %p67_p6 = scmp.ne.s32.totalorder %s959_s19, %s955_s18 }
  0x19   : > { %1415 = sst [smem:[#allocation18_spill]] %s1451_s29  ;;  %p1090_p5 = por %p62_p4, %p61_p2 }
  0x1a   : > { %s589_s8 = sshll.u32 %s1451_s29, 1  ;;  %p68_p7 = scmp.eq.s32.totalorder %s1072_s26, 0 }
  0x1b   : > { %s48_s9 = sadd.s32 %s589_s8, %s1445_s28  ;;  %s111_s10 = ssub.s32 %s979_s24, %s1451_s29 }
  0x1c   : > { %p49_p8 = scmp.lt.s32.totalorder %s48_s9, 3  ;;  %p1101_p9 = por %p68_p7, %p67_p6 }
  0x1d   : > { %p112_p10 = scmp.eq.s32.totalorder %s111_s10, 0  ;;  %s114_s12 = sadd.s32 1, %s951_s17 }
  0x1e   : > { %s1417_s11 = scalar_select %p1101_p9, 1, 0 }
  0x1f   : > { %s1453_s9 = smov (!%p49_p8, %s48_s9), 3  ;;  %p124_p11 = scmp.ne.s32.totalorder %s951_s17, %s947_s16 }
  0x20   : > { %s1107_s13 = scalar_select %p112_p10, %s951_s17, %s114_s12  }
  0x21   : > { %s51_s14 = ssub.s32 %s1449_s5, %s1453_s9  ;;  %p125_p13 = scmp.eq.s32.totalorder %s1072_s26, 3 }
  0x22   : > { %p52_p12 = scmp.eq.s32.totalorder %s51_s14, 0  ;;  %p130_p0 = scmp.ne.s32.totalorder %s947_s16, %s943_s15 }
  0x23   : > { %p131_p1 = scmp.eq.s32.totalorder %s1402_s27, 3  ;;  %p1120_p2 = por %p125_p13, %p124_p11 }
  0x24   : > { %s1118_s18 = scalar_select %p52_p12, %s963_s20, %s54_s6  }
  0x25   : > { %s1419_s30 = scalar_select %p1120_p2, 1, 0 }
  0x26   : > { %1418 = sst [smem:[#allocation19_spill]] %s1118_s18  ;;  %p1124_p3 = por %p131_p1, %p130_p0 }
  0x27   : > { %p646_p4 = scmp.lt.s32.totalorder %s983_s25, 4  ;;  %s1130_s9 = sand.u32 1, %s963_s20  }
  0x28   : > { %s1420_s8 = scalar_select %p1124_p3, 1, 0 }
  0x29   : > { %s1407_s10 = sshll.u32 %s1449_s5, 7  ;;  %s1406_s12 = sshll.u32 %s1130_s9, 3 }
  0x2a   : > { %s1421_s0 = sld [smem:[#allocation20_spill]]  ;;  %s207_s29 = scalar_lea.vmem [#allocation2], %s1406_s12 }
  0x2b   : > { %s218_s28 = sshll.u32 %s207_s29, 4  ;;  %p1145_p6 = pnand %p646_p4, %p1090_p5  ;;  %s1149_s28 = int_to_ptr.vmem [resolvable:$true] %s218_s28 }
  0x2c   : > { %s204_s14 = scalar_lea.sflag [#allocation3], %s1130_s9 }
  0x2d   : > { %p739_p11 = pneg %p1145_p6 }
  0x30   : > { %s1139_s27 = scalar_lea.hbm %s1421_s0, %s1407_s10  ;;  %s742_s12 = scalar_lea.hbm %s1421_s0, 512 }
  0x31   : > { %s737_s6 = scalar_lea.hbm %s1139_s27, 128  ;;  %p743_p5 = scmp.lt.u32.totalorder %s1139_s27, %s1421_s0 }
  0x32   : > { %p738_p10 = scmp.ne.s32.totalorder %s1139_s27, %s737_s6  ;;  %p744_p0 = scmp.lt.u32.totalorder %s742_s12, %s737_s6 }
  0x33   : > { %p746_p4 = scmp.lt.u32.totalorder %s737_s6, %s1139_s27 }
  0x34   : > { %p740_p12 = pnand %p739_p11, %p738_p10  ;;  %p745_p1 = por %p744_p0, %p743_p5 }
  0x36   : > { %p741_p13 = pneg %p740_p12  ;;  %p747_p7 = por %p746_p4, %p745_p1 }
  0x38   : > { %p748_p8 = pnand %p747_p7, %p741_p13 }
  0x3a   : > { %751 = shalt.err (!%p748_p8)
}
  0x3b   : > { %s752_s18 = scalar_lea.vmem %s1149_s28, 128  ;;  %s985_s29 = smov [#allocation2]  }
  0x3c   : > { %p753_p10 = scmp.ne.s32.totalorder %s1149_s28, %s752_s18  ;;  %s757_s7 = sshll.u32 %s985_s29, 4  ;;  %s758_s7 = int_to_ptr.vmem [resolvable:$false] %s757_s7 }
  0x3d   : > { %s759_s23 = scalar_lea.vmem %s758_s7, 256  ;;  %p760_p2 = scmp.lt.s32.totalorder %s1149_s28, %s758_s7 }
  0x3e   : > { %p755_p12 = pnand %p753_p10, %p739_p11  ;;  %p761_p5 = scmp.lt.s32.totalorder %s759_s23, %s752_s18 }
  0x40   : > { %p756_p3 = pneg %p755_p12  ;;  %p762_p0 = por %p761_p5, %p760_p2 }
  0x42   : > { %p763_p1 = pnand %p762_p0, %p756_p3 }
  0x44   : > { %766 = shalt.err (!%p763_p1)
}
  0x45   : > { %632 = dma.hbm_to_vmem [thread:$0]  (!%p1145_p6), %s1139_s27, 128, %s1149_s28, %s204_s14  }
  0x46   : > { %p1423_p7 = scmp.lt.s32.totalorder %s983_s25, 5  ;;  %p1424_p8 = scmp.ge.s32.totalorder %s983_s25, 1 }
  0x47   : > { %s1426_s18 = sshll.u32 %s1449_s5, 7  ;;  %s1427_s7 = sshll.u32 %s1130_s9, 3 }
  0x48   : > { %p1183_p13 = pnand %p1424_p8, %p1423_p7  ;;  %s1192_s29 = scalar_lea.hbm %s1398_s1, %s1426_s18 }
  0x49   : > { %s229_s23 = scalar_lea.vmem [#allocation5], %s1427_s7  ;;  %s226_s27 = scalar_lea.sflag [#allocation6], %s1130_s9 }
  0x4a   : > { %s1425_s10 = scalar_select %p1183_p13, 1, 0 }
  0x4b   : > { %s240_s0 = sshll.u32 %s229_s23, 4  ;;  %s767_s28 = scalar_lea.hbm %s1192_s29, 128  ;;  %s241_s0 = int_to_ptr.vmem [resolvable:$true] %s240_s0 }
  0x4c   : > { %p768_p2 = scmp.ne.s32.totalorder %s1192_s29, %s767_s28  ;;  %s772_s18 = scalar_lea.hbm %s1398_s1, 512 }
  0x4d   : > { %p773_p10 = scmp.lt.u32.totalorder %s1192_s29, %s1398_s1  ;;  %p774_p12 = scmp.lt.u32.totalorder %s772_s18, %s767_s28 }
  0x4e   : > { %p770_p3 = pnand %p768_p2, %p739_p11  ;;  %p776_p0 = scmp.lt.u32.totalorder %s767_s28, %s1192_s29 }
  0x4f   : > { %p775_p5 = por %p774_p12, %p773_p10 }
  0x50   : > { %p771_p4 = pneg %p770_p3 }
  0x51   : > { %p777_p1 = por %p776_p0, %p775_p5 }
  0x53   : > { %p778_p7 = pnand %p777_p1, %p771_p4 }
  0x55   : > { %781 = shalt.err (!%p778_p7)
}
  0x56   : > { %s782_s9 = scalar_lea.vmem %s241_s0, 128  ;;  %s986_s7 = smov [#allocation5]  }
  0x57   : > { %p783_p8 = scmp.ne.s32.totalorder %s241_s0, %s782_s9  ;;  %s787_s23 = sshll.u32 %s986_s7, 4  ;;  %s788_s23 = int_to_ptr.vmem [resolvable:$false] %s787_s23 }
  0x58   : > { %s789_s5 = scalar_lea.vmem %s788_s23, 256  ;;  %p790_p9 = scmp.lt.s32.totalorder %s241_s0, %s788_s23 }
  0x59   : > { %p785_p2 = pnand %p783_p8, %p739_p11  ;;  %p791_p13 = scmp.lt.s32.totalorder %s789_s5, %s782_s9 }
  0x5b   : > { %p786_p3 = pneg %p785_p2  ;;  %p792_p10 = por %p791_p13, %p790_p9 }
  0x5d   : > { %p793_p12 = pnand %p792_p10, %p786_p3 }
  0x5f   : > { %796 = shalt.err (!%p793_p12)
}
  0x60   : > { %635 = dma.hbm_to_vmem [thread:$0]  (!%p1145_p6), %s1192_s29, 128, %s241_s0, %s226_s27  }
  0x61   : > { %p1428_p4 = scmp.ne.s32.totalorder %s1425_s10, 0 }
  0x62   : > { %s251_s28 = sand.u32 (!%p1428_p4), 1, %s959_s19   ;;  %p1429_p11 = scmp.ne.s32.totalorder (!%p1428_p4), %s1417_s11, 0 }
  0x63   : > { %249 = sbr.rel (%p1428_p4) target bundleno = 219 (0xdb), region = 28  ;;  %s601_s14 = sshll.u32 (!%p1428_p4), %s251_s28, 3 }
  0x64   : > { %s252_s18 = scalar_lea.sflag (!%p1428_p4), [#allocation3], %s251_s28  ;;  %s1219_s12 = scalar_lea.vmem (!%p1428_p4), [#allocation2], %s601_s14 }
  0x6a   : > { %926 = dma.done.wait (%p1429_p11), %s252_s18, 128  }
  0x6b   : > { %928 = vsyncadd (%p1429_p11), %s252_s18, 4294967168  ;;  %s261_s6 = scalar_lea.sflag [#allocation6], %s251_s28  ;;  %s1225_s24 = scalar_lea.vmem [#allocation5], %s601_s14 }
  0x6c   : > { %930 = dma.done.wait (%p1429_p11), %s261_s6, 128  }
  0x6d   : > { %932 = vsyncadd (%p1429_p11), %s261_s6, 4294967168  ;;  %s287_s0 = sand.u32 1, %s947_s16   ;;  %p606_p9 = scmp.ne.s32.totalorder %s967_s21, 0 }
  0x6e   : > { %s603_s10 = sshll.u32 %s287_s0, 3  ;;  %v987_v0 = vmov (!%p606_p9), 0.0  }
  0x6f   : > { %s1234_s29 = scalar_lea.vmem [#allocation7], %s603_s10  ;;  %s1236_s27 = scalar_lea.vmem [#allocation8], %s603_s10 }
  0x70   : > { %s1238_s9 = scalar_lea.vmem [#allocation10], %s603_s10  ;;  %315 = sbr.rel (%p606_p9) target bundleno = 119 (0x77), region = 40  ;;  %316 = vst [vmem:[%s1234_s29] sm:$0xff] (!%p606_p9), %v987_v0  ;;  %317 = vst [vmem:[%s1236_s27] sm:$0xff] (!%p606_p9), %v987_v0 }
  0x71   : > { %318 = vst [vmem:[%s1238_s9] sm:$0xff] (!%p606_p9), %v987_v0 }
  0x77 PF: > { %s607_s11 = sshll.u32 %s971_s22, 1 }
  0x78   : > { %s320_s7 = sadd.s32 %s967_s21, %s607_s11 }
  0x79   : > { %s608_s23 = sshll.u32 %s320_s7, 3 }
  0x7a   : > { %s322_s5 = ssub.s32 32, %s608_s23 }
  0x7b   : > { %p609_p6 = scmp.lt.s32.totalorder %s322_s5, 8 }
  0x7c   : > { %v327_v1 = vld [vmem:[%s1225_s24] sm:$0xff] (!%p609_p6)  ;;  %v331_v2 = vld [vmem:[%s1234_s29] sm:$0xff] (!%p609_p6) }
  0x7d   : > { %326 = sbr.rel (%p609_p6) target bundleno = 133 (0x85), region = 44  ;;  %v335_v3 = vld [vmem:[%s1236_s27] sm:$0xff] (!%p609_p6)  ;;  %v333_v4 = vadd.f32 (!%p609_p6), %v331_v2, %v327_v1  ;;  %v336_v5 = vmul.f32 (!%p609_p6), %v327_v1, %v327_v1  ;;  %v328_v6 = vld [vmem:[%s1219_s12] sm:$0xff] (!%p609_p6) }
  0x7e   : > { %v329_v7 = vsub.f32 (!%p609_p6), %v327_v1, %v328_v6  ;;  %v340_v9 = vld [vmem:[%s1238_s9] sm:$0xff] (!%p609_p6) }
  0x7f   : > { %334 = vst [vmem:[%s1234_s29] sm:$0xff] (!%p609_p6), %v333_v4  ;;  %v338_v8 = vadd.f32 (!%p609_p6), %v336_v5, %v335_v3 }
  0x80   : > { %v330_v10 = vmul.f32 (!%p609_p6), %v329_v7, %v329_v7 }
  0x81   : > { %339 = vst [vmem:[%s1236_s27] sm:$0xff] (!%p609_p6), %v338_v8 }
  0x82   : > { %v342_v11 = vadd.f32 (!%p609_p6), %v340_v9, %v330_v10 }
  0x84   : > { %343 = vst [vmem:[%s1238_s9] sm:$0xff] %v342_v11 }
  0x85 PF: > { %p610_p13 = scmp.ge.s32.totalorder %s322_s5, 8 }
  0x86   : > { %v348_v12 = vlaneseq (!%p610_p13)  ;;  %v350_v13 = vstv (!%p610_p13), %s322_s5  ;;  %v352_v15 = vld [vmem:[%s1225_s24] sm:$0xff] (!%p610_p13)  ;;  %v354_v16 = vld [vmem:[%s1219_s12] sm:$0xff] (!%p610_p13) }
  0x87   : > { %347 = sbr.rel (%p610_p13) target bundleno = 147 (0x93), region = 48  ;;  %v358_v17 = vld [vmem:[%s1234_s29] sm:$0xff] (!%p610_p13) }
  0x88   : > { %v349_v14 = vshrl.u32 (!%p610_p13), %v348_v12, 7 }
  0x89   : > { %v362_v19 = vld [vmem:[%s1236_s27] sm:$0xff] (!%p610_p13) }
  0x8a   : > { %vm351_vm0 = vcmp.lt.s32.totalorder (!%p610_p13), %v349_v14, %v350_v13 }
  0x8b   : > { %v353_v18 = vsel (!%p610_p13), %vm351_vm0, %v352_v15, 0.0  ;;  %v355_v20 = vsel (!%p610_p13), %vm351_vm0, %v354_v16, 0.0  ;;  %v367_v24 = vld [vmem:[%s1238_s9] sm:$0xff] (!%p610_p13) }
  0x8c   : > { %v360_v21 = vadd.f32 (!%p610_p13), %v358_v17, %v353_v18  ;;  %v363_v22 = vmul.f32 (!%p610_p13), %v353_v18, %v353_v18  ;;  %v356_v23 = vsub.f32 (!%p610_p13), %v353_v18, %v355_v20 }
  0x8e   : > { %361 = vst [vmem:[%s1234_s29] sm:$0xff] %v360_v21  ;;  %v365_v25 = vadd.f32 %v363_v22, %v362_v19  ;;  %v357_v26 = vmul.f32 %v356_v23, %v356_v23 }
  0x90   : > { %366 = vst [vmem:[%s1236_s27] sm:$0xff] %v365_v25  ;;  %v369_v27 = vadd.f32 %v367_v24, %v357_v26 }
  0x92   : > { %370 = vst [vmem:[%s1238_s9] sm:$0xff] %v369_v27 }
  0x93 PF: > { %s376_s21 = sand.u32 1, %s1072_s26   ;;  %s1264_s28 = sshll.u32 %s971_s22, 7 }
  0x94   : > { %s1270_s12 = scalar_lea.hbm %s1400_s3, %s1264_s28  ;;  %s408_s6 = sshll.u32 %s1236_s27, 4  ;;  %s1273_s6 = int_to_ptr.vmem [resolvable:$true] %s408_s6 }
  0x95   : > { %s1279_s11 = scalar_lea.hbm %s1399_s2, %s1264_s28  ;;  %s1281_s22 = scalar_lea.sflag [#allocation9], %s376_s21 }
  0x96   : > { %s797_s26 = scalar_lea.vmem %s1273_s6, 128  ;;  %p1430_p0 = scmp.ne.s32.totalorder %s1419_s30, 0 }
  0x97   : > { %p798_p5 = scmp.ne.s32.totalorder %s1273_s6, %s797_s26  ;;  %s988_s7 = smov [#allocation8]  }
  0x98   : > { %s801_s23 = sshll.u32 %s988_s7, 4  ;;  %s802_s23 = int_to_ptr.vmem [resolvable:$false] %s801_s23 }
  0x99   : > { %p799_p1 = pnand %p798_p5, %p1430_p0  ;;  %s803_s27 = scalar_lea.vmem %s802_s23, 256 }
  0x9a   : > { %p804_p8 = scmp.lt.s32.totalorder %s1273_s6, %s802_s23  ;;  %p805_p2 = scmp.lt.s32.totalorder %s803_s27, %s797_s26 }
  0x9b   : > { %p800_p7 = pneg %p799_p1 }
  0x9c   : > { %p806_p3 = por %p805_p2, %p804_p8 }
  0x9e   : > { %p807_p10 = pnand %p806_p3, %p800_p7 }
  0xa0   : > { %810 = shalt.err (!%p807_p10)
}
  0xa1   : > { %s811_s5 = scalar_lea.hbm %s1270_s12, 128  ;;  %s815_s18 = scalar_lea.hbm %s1400_s3, 256 }
  0xa2   : > { %p812_p12 = scmp.ne.s32.totalorder %s1270_s12, %s811_s5  ;;  %p816_p9 = scmp.lt.u32.totalorder %s1270_s12, %s1400_s3 }
  0xa3   : > { %p817_p6 = scmp.lt.u32.totalorder %s815_s18, %s811_s5  ;;  %p819_p5 = scmp.lt.u32.totalorder %s811_s5, %s1270_s12 }
  0xa4   : > { %p813_p4 = pnand %p812_p12, %p1430_p0 }
  0xa5   : > { %p818_p13 = por %p817_p6, %p816_p9 }
  0xa6   : > { %p814_p11 = pneg %p813_p4 }
  0xa7   : > { %p820_p1 = por %p819_p5, %p818_p13 }
  0xa9   : > { %p821_p7 = pnand %p820_p1, %p814_p11 }
  0xab   : > { %824 = shalt.err (!%p821_p7)
}
  0xac   : > { %624 = dma.vmem_to_hbm [thread:$0]  (%p1430_p0), %s1273_s6, 128, %s1270_s12, %s1281_s22  }
  0xad   : > { %s395_s26 = sshll.u32 %s1234_s29, 4  ;;  %s1310_s27 = scalar_lea.hbm %s1401_s4, %s1264_s28  ;;  %s1312_s26 = int_to_ptr.vmem [resolvable:$true] %s395_s26 }
  0xae   : > { %s421_s5 = sshll.u32 %s1238_s9, 4  ;;  %s372_s21 = scalar_lea.sflag [#allocation4], %s287_s0  ;;  %s422_s5 = int_to_ptr.vmem [resolvable:$true] %s421_s5 }
  0xaf   : > { %s825_s14 = scalar_lea.vmem %s1312_s26, 128  ;;  %s989_s12 = smov [#allocation7]  }
  0xb0   : > { %p826_p8 = scmp.ne.s32.totalorder %s1312_s26, %s825_s14  ;;  %s829_s29 = sshll.u32 %s989_s12, 4  ;;  %s830_s29 = int_to_ptr.vmem [resolvable:$false] %s829_s29 }
  0xb1   : > { %s831_s6 = scalar_lea.vmem %s830_s29, 256  ;;  %p832_p10 = scmp.lt.s32.totalorder %s1312_s26, %s830_s29 }
  0xb2   : > { %p827_p2 = pnand %p826_p8, %p1430_p0  ;;  %p833_p12 = scmp.lt.s32.totalorder %s831_s6, %s825_s14 }
  0xb4   : > { %p828_p3 = pneg %p827_p2  ;;  %p834_p4 = por %p833_p12, %p832_p10 }
  0xb6   : > { %p835_p11 = pnand %p834_p4, %p828_p3 }
  0xb8   : > { %838 = shalt.err (!%p835_p11)
}
  0xb9   : > { %s839_s0 = scalar_lea.hbm %s1279_s11, 128  ;;  %s843_s24 = scalar_lea.hbm %s1399_s2, 256 }
  0xba   : > { %p840_p9 = scmp.ne.s32.totalorder %s1279_s11, %s839_s0  ;;  %p844_p5 = scmp.lt.u32.totalorder %s1279_s11, %s1399_s2 }
  0xbb   : > { %p845_p1 = scmp.lt.u32.totalorder %s843_s24, %s839_s0  ;;  %p847_p8 = scmp.lt.u32.totalorder %s839_s0, %s1279_s11 }
  0xbc   : > { %p841_p6 = pnand %p840_p9, %p1430_p0 }
  0xbd   : > { %p846_p7 = por %p845_p1, %p844_p5 }
  0xbe   : > { %p842_p13 = pneg %p841_p6 }
  0xbf   : > { %p848_p2 = por %p847_p8, %p846_p7 }
  0xc1   : > { %p849_p3 = pnand %p848_p2, %p842_p13 }
  0xc3   : > { %852 = shalt.err (!%p849_p3)
}
  0xc4   : > { %623 = dma.vmem_to_hbm [thread:$0]  (%p1430_p0), %s1312_s26, 128, %s1279_s11, %s372_s21  }
  0xc5   : > { %s853_s23 = scalar_lea.vmem %s422_s5, 128  ;;  %s990_s14 = smov [#allocation10]  }
  0xc6   : > { %p854_p10 = scmp.ne.s32.totalorder %s422_s5, %s853_s23  ;;  %s857_s12 = sshll.u32 %s990_s14, 4  ;;  %s858_s12 = int_to_ptr.vmem [resolvable:$false] %s857_s12 }
  0xc7   : > { %s859_s29 = scalar_lea.vmem %s858_s12, 256  ;;  %p860_p11 = scmp.lt.s32.totalorder %s422_s5, %s858_s12 }
  0xc8   : > { %p855_p12 = pnand %p854_p10, %p1430_p0  ;;  %p861_p9 = scmp.lt.s32.totalorder %s859_s29, %s853_s23 }
  0xca   : > { %p856_p4 = pneg %p855_p12  ;;  %p862_p6 = por %p861_p9, %p860_p11 }
  0xcc   : > { %p863_p13 = pnand %p862_p6, %p856_p4 }
  0xce   : > { %866 = shalt.err (!%p863_p13)
}
  0xcf   : > { %s867_s9 = scalar_lea.hbm %s1310_s27, 128  ;;  %s871_s21 = scalar_lea.hbm %s1401_s4, 256 }
  0xd0   : > { %p868_p5 = scmp.ne.s32.totalorder %s1310_s27, %s867_s9  ;;  %p872_p8 = scmp.lt.u32.totalorder %s1310_s27, %s1401_s4 }
  0xd1   : > { %p873_p2 = scmp.lt.u32.totalorder %s871_s21, %s867_s9  ;;  %p875_p10 = scmp.lt.u32.totalorder %s867_s9, %s1310_s27 }
  0xd2   : > { %p869_p1 = pnand %p868_p5, %p1430_p0 }
  0xd3   : > { %p874_p3 = por %p873_p2, %p872_p8 }
  0xd4   : > { %p870_p7 = pneg %p869_p1 }
  0xd5   : > { %p876_p12 = por %p875_p10, %p874_p3 }
  0xd7   : > { %p877_p4 = pnand %p876_p12, %p870_p7 }
  0xd9   : > { %880 = shalt.err (!%p877_p4)
}
  0xda   : > { %625 = dma.vmem_to_hbm [thread:$0]  (%p1430_p0), %s422_s5, 128, %s1310_s27, %s1281_s22  }
  0xdb PF: > { %p647_p11 = scmp.ge.s32.totalorder %s983_s25, 2  ;;  %s433_s28 = sand.u32 1, %s943_s15  }
  0xdc   : > { %p1431_p9 = scmp.ne.s32.totalorder %s1420_s8, 0  ;;  %s434_s18 = scalar_lea.sflag [#allocation4], %s433_s28 }
  0xde   : > { %p637_p6 = pnand %p647_p11, %p1431_p9 }
  0xe0   : > { %934 = dma.done.wait (!%p637_p6), %s434_s18, 128  }
  0xe1   : > { %936 = vsyncadd (!%p637_p6), %s434_s18, 4294967168  ;;  %s1432_s24 = sadd.s32 4294967294, %s983_s25  }
  0xe2   : > { %s442_s10 = sand.u32 1, %s1432_s24  }
  0xe3   : > { %s443_s7 = scalar_lea.sflag [#allocation9], %s442_s10 }
  0xe4   : > { %938 = dma.done.wait (!%p637_p6), %s443_s7, 256  }
  0xe5   : > { %940 = vsyncadd (!%p637_p6), %s443_s7, 4294967040  ;;  %s27_s25 = sadd.s32 1, %s983_s25   ;;  %s1433_s30 = sld [smem:[#allocation19_spill]] }
  0xe6   : > { %p24_p0 = scmp.ge.s32.totalorder %s27_s25, 6   ;;  %s1434_s21 = sld [smem:[#allocation15_spill]] }
  0xe7   : > { %s1435_s22 = sld [smem:[#allocation16_spill]]  ;;  %s1436_s23 = sld [smem:[#allocation17_spill]] }
  0xe8   : > { %s1437_s24 = sld [smem:[#allocation18_spill]]  ;;  %s1438_s15 = smov %s947_s16 }
  0xe9   : > { %s1439_s16 = smov %s951_s17  ;;  %s1440_s17 = smov %s1107_s13 }
  0xea   : > { %s1441_s18 = smov %s959_s19  ;;  %s1442_s19 = smov %s963_s20 }
  0xeb   : > { %s1443_s20 = smov %s1433_s30  ;;  %26 = sbr.rel (!%p24_p0) target bundleno = 15 (0xf), region = 130 }
  0xf2   :  { %457 = vsyncpa [#allocation3], 1 }
  0xf3   :  { %459 = vsyncpa [#allocation3 + $0x1], 1 }
  0xf4   :  { %460 = vsyncpa [#allocation6], 1 }
  0xf5   :  { %462 = vsyncpa [#allocation6 + $0x1], 1 }
  0xf6   :  { %463 = vsyncpa [#allocation4], 1 }
  0xf7   :  { %465 = vsyncpa [#allocation4 + $0x1], 1 }
  0xf8   :  { %466 = vsyncpa [#allocation9], 1 }
  0xf9   :  { %468 = vsyncpa [#allocation9 + $0x1], 1 }

</bundles_post_ra>
